<compile_context>
chip_gen: v5e
topology: v5e:2x2
jax: 0.10.0
libtpu: 0.0.40
codegen_flags: <defaults>
</compile_context>

<pallas_src>
import jax
import jax.numpy as jnp
from jax import lax
from jax.experimental import pallas as pl
from jax.experimental.pallas import tpu as pltpu


def conv_block_kernel(xcol_ref, w_ref, o_ref):
    """One grid step = `bn` batch elements.

    xcol_ref: (bn, 9*Cin, H*W)  bf16 im2col blocks, row = (dy*3+dx)*Cin + ci
    w_ref:    (Cout, 9*Cin)     bf16 conv weights, column order matches xcol rows
    o_ref:    (bn, Cout, H*W)   f32 output (NCHW-major, lane-dense last dim)
    """
    bn = xcol_ref.shape[0]
    hw = xcol_ref.shape[2]
    inv_hw = 1.0 / hw

    for b in range(bn):  # static unroll; bn is 1 (v7x) or N (v5e/v6e)
        # All 9 taps as a single MXU matmul; result is already (Cout, H*W) and
        # lane-dense -> no transpose, no relayout before the norm.
        acc = jnp.dot(w_ref[...], xcol_ref[b],
                      preferred_element_type=jnp.float32)          # (Cout, HW) f32

        # InstanceNorm2d(affine=False, eps=1e-5): one-pass per-channel stats over
        # the spatial (lane) axis. Conv bias intentionally omitted: the mean
        # subtraction cancels a per-channel bias exactly.
        s1 = jnp.sum(acc, axis=1, keepdims=True)                   # (Cout, 1)
        s2 = jnp.sum(acc * acc, axis=1, keepdims=True)             # (Cout, 1)
        mean = s1 * inv_hw
        var = s2 * inv_hw - mean * mean                            # biased variance
        normed = (acc - mean) * lax.rsqrt(var + 1e-5)

        # ReLU + lane-dense, NCHW-major store.
        o_ref[b] = jnp.maximum(normed, 0.0).astype(o_ref.dtype)


def _tensorcores_per_chip():
    """2 on v7x, 1 on v5e/v6e. Detection failure only affects perf, not correctness."""
    try:
        kind = jax.devices()[0].device_kind.lower()
    except Exception:
        return 1
    return 2 if ("v7" in kind or "7x" in kind) else 1


def conv_block_forward(x_nchw, weight, bias=None):
    """ConvBlock forward. x_nchw: (N, Cin, H, W); weight: (Cout, Cin, 3, 3).

    `bias` is accepted for nn.Conv2d signature parity but is NOT used: with
    InstanceNorm2d(affine=False) downstream the per-channel conv bias cancels exactly.
    """
    del bias  # mathematically a no-op under the instance norm
    N, Cin, H, W = x_nchw.shape
    Cout = weight.shape[0]
    HW = H * W

    # --- XLA-side im2col (layout plumbing; ~tens of KB extra HBM traffic total) ------
    # Pad directly in NCHW, take the 9 shifted windows, stack tap-major along rows.
    x_pad = jnp.pad(x_nchw, ((0, 0), (0, 0), (1, 1), (1, 1)))
    patches = [x_pad[:, :, dy:dy + H, dx:dx + W].reshape(N, Cin, HW)
               for dy in range(3) for dx in range(3)]
    x_im2col = jnp.concatenate(patches, axis=1).astype(jnp.bfloat16)   # (N, 9*Cin, HW)

    # (Cout, Cin, 3, 3) -> (Cout, 3, 3, Cin) -> (Cout, 9*Cin); column order matches the
    # im2col row order (dy*3 + dx)*Cin + ci.
    w_mat = jnp.transpose(weight, (0, 2, 3, 1)).reshape(Cout, 9 * Cin).astype(jnp.bfloat16)

    # Batch folding: single-TC chips (v5e/v6e) -> whole batch in one grid step
    # (amortizes the ~0.35 us per-step overhead); v7x -> one image per "parallel"
    # grid step so both TensorCores stay busy.
    fold = _tensorcores_per_chip() == 1
    bn = N if fold else 1
    if N % bn:
        bn = 1
    grid = (N // bn,)

    out_flat = pl.pallas_call(
        conv_block_kernel,
        out_shape=jax.ShapeDtypeStruct((N, Cout, HW), jnp.float32),
        grid=grid,
        in_specs=[
            pl.BlockSpec((bn, 9 * Cin, HW), lambda n: (n, 0, 0)),
            pl.BlockSpec((Cout, 9 * Cin), lambda n: (0, 0)),
        ],
        out_specs=pl.BlockSpec((bn, Cout, HW), lambda n: (n, 0, 0)),
        compiler_params=pltpu.CompilerParams(
            dimension_semantics=("parallel",),
            # Explicit VMEM budget (v7x physical VMEM is 64 MiB; scoped default 32 MiB).
            vmem_limit_bytes=32 * 1024 * 1024,
        ),
    )(x_im2col, w_mat)

    # TODO(synk): for large H*W*Cin (e.g. 256x256 spatial, Cin=64) the per-step im2col
    # block no longer fits v7x's 64 MiB VMEM -- switch to H-tiled blocks with a
    # two-pass (stats then normalize) instance norm.

    # Already NCHW-major: (N, Cout, H*W) -> (N, Cout, H, W) is a free reshape.
    return out_flat.reshape(N, Cout, H, W)


def conv_block_reference(x_nchw, weight, bias, eps=1e-5):
    """Pure-JAX reference mirroring nn.Conv2d(+bias) + nn.InstanceNorm2d + ReLU (NCHW)."""
    y = lax.conv_general_dilated(
        x_nchw.astype(jnp.float32), weight.astype(jnp.float32),
        window_strides=(1, 1), padding=((1, 1), (1, 1)),
        dimension_numbers=("NCHW", "OIHW", "NCHW"),
        precision=lax.Precision.HIGHEST)
    y = y + bias.reshape(1, -1, 1, 1)
    mean = jnp.mean(y, axis=(2, 3), keepdims=True)
    var = jnp.mean((y - mean) ** 2, axis=(2, 3), keepdims=True)
    y = (y - mean) * lax.rsqrt(var + eps)
    return jnp.maximum(y, 0.0)


if __name__ == "__main__":
    # Small shapes consistent with the module: batch=2, in_channels=4,
    # out_channels=8, spatial 16x16.
    N, Cin, Cout, H, W = 2, 4, 8, 16, 16

    key = jax.random.PRNGKey(0)
    kx, kw, kb = jax.random.split(key, 3)

    x = jax.random.normal(kx, (N, Cin, H, W), dtype=jnp.float32)
    weight = jax.random.normal(kw, (Cout, Cin, 3, 3), dtype=jnp.float32) * 0.1
    bias = jax.random.normal(kb, (Cout,), dtype=jnp.float32) * 0.1

    out = jax.block_until_ready(conv_block_forward(x, weight, bias))

    # Reference on the same bf16-rounded data path (all math in f32) and WITH the conv
    # bias: this also verifies that dropping the bias in the kernel is exact under
    # InstanceNorm(affine=False).
    x_bf = x.astype(jnp.bfloat16).astype(jnp.float32)
    w_bf = weight.astype(jnp.bfloat16).astype(jnp.float32)
    ref = jax.block_until_ready(conv_block_reference(x_bf, w_bf, bias))

    assert out.shape == (N, Cout, H, W)
    assert jnp.allclose(out, ref, atol=1e-3, rtol=1e-3), "mismatch vs reference"

    print("KERNEL_OK")
</pallas_src>

<mosaic_0001>
module attributes {stable_mosaic.version = 11 : i64} {
  func.func @conv_block_kernel(%arg0: i32, %arg1: memref<2x36x256xbf16, #tpu.memory_space<vmem>>, %arg2: memref<8x36xbf16, #tpu.memory_space<vmem>>, %arg3: memref<2x8x256xf32, #tpu.memory_space<vmem>>) attributes {dimension_semantics = [#tpu.dimension_semantics<parallel>], iteration_bounds = array<i64: 1>, scalar_prefetch = 0 : i64, scratch_operands = 0 : i64, tpu.core_type = #tpu.core_type<tc>, window_params = [{transform_indices = @transform_0, window_bounds = array<i64: 2, 36, 256>}, {pipeline_mode = #tpu.pipeline_mode<synchronous>, transform_indices = @transform_1, window_bounds = array<i64: 8, 36>}, {transform_indices = @transform_2, window_bounds = array<i64: 2, 8, 256>}]} {
    %c0 = arith.constant 0 : index
    %c0_0 = arith.constant 0 : index
    %0 = vector.load %arg2[%c0, %c0_0] : memref<8x36xbf16, #tpu.memory_space<vmem>>, vector<8x36xbf16>
    %c0_1 = arith.constant 0 : index
    %c0_2 = arith.constant 0 : index
    %c0_3 = arith.constant 0 : index
    %1 = vector.load %arg1[%c0_1, %c0_2, %c0_3] : memref<2x36x256xbf16, #tpu.memory_space<vmem>>, vector<1x36x256xbf16>
    %2 = vector.shape_cast %1 : vector<1x36x256xbf16> to vector<36x256xbf16>
    %cst = arith.constant dense<0.000000e+00> : vector<8x256xf32>
    %3 = tpu.matmul %0, %2, %cst {dimension_numbers = #tpu.dot_dimension_numbers<[1], [0], [0], [1], [0, 0, 1, 1], [], []>} : vector<8x36xbf16>, vector<36x256xbf16>, vector<8x256xf32> -> vector<8x256xf32>
    %cst_4 = arith.constant dense<0.000000e+00> : vector<8xf32>
    %4 = vector.multi_reduction <add>, %3, %cst_4 [1] : vector<8x256xf32> to vector<8xf32>
    %5 = vector.shape_cast %4 : vector<8xf32> to vector<8x1xf32>
    %6 = arith.mulf %3, %3 : vector<8x256xf32>
    %cst_5 = arith.constant dense<0.000000e+00> : vector<8xf32>
    %7 = vector.multi_reduction <add>, %6, %cst_5 [1] : vector<8x256xf32> to vector<8xf32>
    %8 = vector.shape_cast %7 : vector<8xf32> to vector<8x1xf32>
    %cst_6 = arith.constant 3.906250e-03 : f32
    %9 = vector.broadcast %cst_6 : f32 to vector<8x1xf32>
    %10 = arith.mulf %5, %9 : vector<8x1xf32>
    %cst_7 = arith.constant 3.906250e-03 : f32
    %11 = vector.broadcast %cst_7 : f32 to vector<8x1xf32>
    %12 = arith.mulf %8, %11 : vector<8x1xf32>
    %13 = arith.mulf %10, %10 : vector<8x1xf32>
    %14 = arith.subf %12, %13 : vector<8x1xf32>
    %15 = vector.broadcast %10 : vector<8x1xf32> to vector<8x256xf32>
    %16 = arith.subf %3, %15 : vector<8x256xf32>
    %cst_8 = arith.constant 9.99999974E-6 : f32
    %17 = vector.broadcast %cst_8 : f32 to vector<8x1xf32>
    %18 = arith.addf %14, %17 : vector<8x1xf32>
    %19 = math.rsqrt %18 : vector<8x1xf32>
    %20 = vector.broadcast %19 : vector<8x1xf32> to vector<8x256xf32>
    %21 = arith.mulf %16, %20 : vector<8x256xf32>
    %cst_9 = arith.constant 0.000000e+00 : f32
    %22 = vector.broadcast %cst_9 : f32 to vector<8x256xf32>
    %23 = arith.maximumf %21, %22 : vector<8x256xf32>
    %c0_10 = arith.constant 0 : index
    %c0_11 = arith.constant 0 : index
    %c0_12 = arith.constant 0 : index
    %24 = vector.load %arg3[%c0_10, %c0_11, %c0_12] : memref<2x8x256xf32, #tpu.memory_space<vmem>>, vector<1x8x256xf32>
    %25 = vector.shape_cast %24 : vector<1x8x256xf32> to vector<8x256xf32>
    %26 = vector.shape_cast %23 : vector<8x256xf32> to vector<1x8x256xf32>
    tpu.vector_store %arg3[%c0_10, %c0_11, %c0_12], %26 {strides = array<i32>} : memref<2x8x256xf32, #tpu.memory_space<vmem>>, vector<1x8x256xf32>,
    %c0_13 = arith.constant 0 : index
    %c0_14 = arith.constant 0 : index
    %27 = vector.load %arg2[%c0_13, %c0_14] : memref<8x36xbf16, #tpu.memory_space<vmem>>, vector<8x36xbf16>
    %c1 = arith.constant 1 : index
    %c0_15 = arith.constant 0 : index
    %c0_16 = arith.constant 0 : index
    %28 = vector.load %arg1[%c1, %c0_15, %c0_16] : memref<2x36x256xbf16, #tpu.memory_space<vmem>>, vector<1x36x256xbf16>
    %29 = vector.shape_cast %28 : vector<1x36x256xbf16> to vector<36x256xbf16>
    %cst_17 = arith.constant dense<0.000000e+00> : vector<8x256xf32>
    %30 = tpu.matmul %27, %29, %cst_17 {dimension_numbers = #tpu.dot_dimension_numbers<[1], [0], [0], [1], [0, 0, 1, 1], [], []>} : vector<8x36xbf16>, vector<36x256xbf16>, vector<8x256xf32> -> vector<8x256xf32>
    %cst_18 = arith.constant dense<0.000000e+00> : vector<8xf32>
    %31 = vector.multi_reduction <add>, %30, %cst_18 [1] : vector<8x256xf32> to vector<8xf32>
    %32 = vector.shape_cast %31 : vector<8xf32> to vector<8x1xf32>
    %33 = arith.mulf %30, %30 : vector<8x256xf32>
    %cst_19 = arith.constant dense<0.000000e+00> : vector<8xf32>
    %34 = vector.multi_reduction <add>, %33, %cst_19 [1] : vector<8x256xf32> to vector<8xf32>
    %35 = vector.shape_cast %34 : vector<8xf32> to vector<8x1xf32>
    %cst_20 = arith.constant 3.906250e-03 : f32
    %36 = vector.broadcast %cst_20 : f32 to vector<8x1xf32>
    %37 = arith.mulf %32, %36 : vector<8x1xf32>
    %cst_21 = arith.constant 3.906250e-03 : f32
    %38 = vector.broadcast %cst_21 : f32 to vector<8x1xf32>
    %39 = arith.mulf %35, %38 : vector<8x1xf32>
    %40 = arith.mulf %37, %37 : vector<8x1xf32>
    %41 = arith.subf %39, %40 : vector<8x1xf32>
    %42 = vector.broadcast %37 : vector<8x1xf32> to vector<8x256xf32>
    %43 = arith.subf %30, %42 : vector<8x256xf32>
    %cst_22 = arith.constant 9.99999974E-6 : f32
    %44 = vector.broadcast %cst_22 : f32 to vector<8x1xf32>
    %45 = arith.addf %41, %44 : vector<8x1xf32>
    %46 = math.rsqrt %45 : vector<8x1xf32>
    %47 = vector.broadcast %46 : vector<8x1xf32> to vector<8x256xf32>
    %48 = arith.mulf %43, %47 : vector<8x256xf32>
    %cst_23 = arith.constant 0.000000e+00 : f32
    %49 = vector.broadcast %cst_23 : f32 to vector<8x256xf32>
    %50 = arith.maximumf %48, %49 : vector<8x256xf32>
    %c1_24 = arith.constant 1 : index
    %c0_25 = arith.constant 0 : index
    %c0_26 = arith.constant 0 : index
    %51 = vector.load %arg3[%c1_24, %c0_25, %c0_26] : memref<2x8x256xf32, #tpu.memory_space<vmem>>, vector<1x8x256xf32>
    %52 = vector.shape_cast %51 : vector<1x8x256xf32> to vector<8x256xf32>
    %53 = vector.shape_cast %50 : vector<8x256xf32> to vector<1x8x256xf32>
    tpu.vector_store %arg3[%c1_24, %c0_25, %c0_26], %53 {strides = array<i32>} : memref<2x8x256xf32, #tpu.memory_space<vmem>>, vector<1x8x256xf32>,
    return
  }
  func.func @transform_0(%arg0: i32) -> (i32, i32, i32) {
    %c0_i32 = arith.constant 0 : i32
    %c0_i32_0 = arith.constant 0 : i32
    %c0_i32_1 = arith.constant 0 : i32
    return %arg0, %c0_i32, %c0_i32_0 : i32, i32, i32
  }
  func.func @transform_1(%arg0: i32) -> (i32, i32) {
    %c0_i32 = arith.constant 0 : i32
    %c0_i32_0 = arith.constant 0 : i32
    %c0_i32_1 = arith.constant 0 : i32
    return %c0_i32, %c0_i32_0 : i32, i32
  }
  func.func @transform_2(%arg0: i32) -> (i32, i32, i32) {
    %c0_i32 = arith.constant 0 : i32
    %c0_i32_0 = arith.constant 0 : i32
    %c0_i32_1 = arith.constant 0 : i32
    return %arg0, %c0_i32, %c0_i32_0 : i32, i32, i32
  }
}

</mosaic_0001>

<bundles_post_ra>
// kernel: tpu_custom_call.1
= control target key start
LH: loop header
LB: loop body
LE: loop exit
PB: predicated region body
PF: predicated region fallthrough
CT: control target
= control target key end

     0   :  { %vm48_vm0 = vcmask 1041408   ;;  %s396_s0 = inlined_call_operand.vmem [shape: bf16[2,36,256], index: 0, kind: input, shape index: {}]   ;;  %s397_s1 = inlined_call_operand.vmem [shape: bf16[8,36], index: 1, kind: input, shape index: {}]   ;;  %s398_s2 = inlined_call_operand.hbm [shape: f32[2,8,256], index: 2, kind: output, shape index: {}]  }
   0x1   :  { %v18_v0 = vld [vmem:[%s396_s0 + $0x20] sm:$0x33]  ;;  %v251_v1 = vld [vmem:[%s396_s0 + $0x48] sm:$0x33]  ;;  %v239_v6 = vld [vmem:[%s396_s0 + $0x10] sm:$0xf] }
   0x2   :  { %v32_v2 = vunpack.c.l.b16 %v18_v0  ;;  %v33_v3 = vunpack.c.h.b16 %v18_v0  ;;  %v132_v4 = vunpack.c.l.b16 %v251_v1  ;;  %v133_v5 = vunpack.c.h.b16 %v251_v1  ;;  %v273_v7 = vld [vmem:[%s396_s0 + $0x14] sm:$0xf0]  ;;  %v272_v12 = vld [vmem:[%s396_s0 + $0x14] sm:$0xf]  ;;  %v241_v13 = vld [vmem:[%s396_s0 + $0x18] sm:$0xf0] }
   0x3   :  { %v262_v14 = vld [vmem:[%s396_s0 + $0x38] sm:$0xf]  ;;  %v277_v15 = vld [vmem:[%s396_s0 + $0x3c] sm:$0xf0]  ;;  %v276_v16 = vld [vmem:[%s396_s0 + $0x3c] sm:$0xf]  ;;  %v240_v22 = vor.u32 %v273_v7, %v239_v6  ;;  %v244_v23 = vor.u32 %v272_v12, %v241_v13 }
   0x4   :  { %v38_v8 = vpack.c.b16 %v32_v2, %v32_v2  ;;  %v39_v9 = vpack.c.b16 %v33_v3, %v33_v3  ;;  %v138_v10 = vpack.c.b16 %v132_v4, %v132_v4  ;;  %v139_v11 = vpack.c.b16 %v133_v5, %v133_v5  ;;  %v264_v17 = vld [vmem:[%s396_s0 + $0x40] sm:$0xf0]  ;;  %v231_v24 = vld [vmem:[%s396_s0] sm:$0xf]  ;;  %v271_v25 = vld [vmem:[%s396_s0 + $0x4] sm:$0xf0] }
   0x5   :  { %v270_v26 = vld [vmem:[%s396_s0 + $0x4] sm:$0xf]  ;;  %v263_v27 = vor.u32 %v277_v15, %v262_v14  ;;  %v267_v28 = vor.u32 %v276_v16, %v264_v17  ;;  %v233_v29 = vld [vmem:[%s396_s0 + $0x8] sm:$0xf0]  ;;  %v254_v30 = vld [vmem:[%s396_s0 + $0x28] sm:$0xf] }
   0x6   :  { %v50_v18 = vsel %vm48_vm0, %v38_v8, 0  ;;  %v53_v19 = vsel %vm48_vm0, %v39_v9, 0  ;;  %v148_v20 = vsel %vm48_vm0, %v138_v10, 0  ;;  %v151_v21 = vsel %vm48_vm0, %v139_v11, 0 }
   0x7   :  { %60 = vmatpush.bf16.msra.mxu0 %v50_v18  ;;  %73 = vmatpush.bf16.msra.mxu1 %v53_v19 }
   0x8   :  { %158 = vmatpush.bf16.msra.mxu2 %v148_v20  ;;  %171 = vmatpush.bf16.msra.mxu3 %v151_v21 }
   0x9   :  { %7 = vsyncpa [#allocation3], 0  ;;  %v275_v31 = vld [vmem:[%s396_s0 + $0x2c] sm:$0xf0]  ;;  %v274_v32 = vld [vmem:[%s396_s0 + $0x2c] sm:$0xf]  ;;  %v232_v34 = vor.u32 %v271_v25, %v231_v24  ;;  %v236_v35 = vor.u32 %v270_v26, %v233_v29 }
   0xa   :  { %v256_v33 = vld [vmem:[%s396_s0 + $0x30] sm:$0xf0]  ;;  %v255_v36 = vor.u32 %v275_v31, %v254_v30  ;;  %v13_v38 = vld [vmem:[%s397_s1] sm:$0xf]  ;;  %vm44_vm1 = vcmask 293888   ;;  %s311_s0 = smov [#allocation2]  }
   0xb   :  { %61 = vmatpush.bf16.msra.mxu0 %v240_v22  ;;  %74 = vmatpush.bf16.msra.mxu1 %v244_v23  ;;  %v259_v37 = vor.u32 %v274_v32, %v256_v33  ;;  %v112_v39 = vld [vmem:[%s397_s1] sm:$0xf]  ;;  %s215_s1 = sshll.u32 %s311_s0, 4  ;;  %s217_s23 = sshll.u32 %s398_s2, 4  ;;  %s216_s1 = int_to_ptr.vmem [resolvable:$true] %s215_s1  ;;  %s218_s23 = int_to_ptr.hbm [resolvable:$true] %s217_s23 }
   0xc   :  { %159 = vmatpush.bf16.msra.mxu2 %v263_v27  ;;  %172 = vmatpush.bf16.msra.mxu3 %v267_v28  ;;  %s312_s24 = smov 256   ;;  %s313_s25 = smov 16  }
   0xf   :  { %62 = vmatpush.bf16.msra.mxu0 %v232_v34  ;;  %75 = vmatpush.bf16.msra.mxu1 %v236_v35 }
  0x10   :  { %160 = vmatpush.bf16.msra.mxu2 %v255_v36  ;;  %173 = vmatpush.bf16.msra.mxu3 %v259_v37 }
  0x12   :  { %245 = vmatmul.msk.bf16.vlgmr.msra.gmra.mxu0 %vm44_vm1, %v13_v38  ;;  %246 = vmatmul.msk.bf16.vlgmr.msra.gmra.mxu1 %vm44_vm1, %v13_v38 }
  0x13   :  { %268 = vmatmul.msk.bf16.vlgmr.msra.gmra.mxu2 %vm44_vm1, %v112_v39  ;;  %269 = vmatmul.msk.bf16.vlgmr.msra.gmra.mxu3 %vm44_vm1, %v112_v39 }
  0x8f   :  { %v64_v40 = vpop.f32.mrf.mxu0  ;;  %v77_v41 = vpop.f32.mrf.mxu1 }
  0x90   :  { %v81_v42 = vadd.f32 %v77_v41, %v64_v40  ;;  %v84_v43 = vmul.f32 %v64_v40, %v64_v40  ;;  %v85_v44 = vmul.f32 %v77_v41, %v77_v41 }
  0x92   :  { %82 = vadd.xlane.f32.xlu0 %v81_v42  ;;  %v86_v45 = vadd.f32 %v85_v44, %v84_v43 }
  0x94   :  { %87 = vadd.xlane.f32.xlu1 %v86_v45 }
  0x96   :  { %v162_v46 = vpop.f32.mrf.mxu2  ;;  %v175_v47 = vpop.f32.mrf.mxu3 }
  0x97   :  { %v66_v48 = vpop.f32.mrf.mxu0  ;;  %v79_v49 = vpop.f32.mrf.mxu1  ;;  %v179_v50 = vadd.f32 %v175_v47, %v162_v46  ;;  %v182_v51 = vmul.f32 %v162_v46, %v162_v46  ;;  %v183_v52 = vmul.f32 %v175_v47, %v175_v47 }
  0x99   :  { %v184_v53 = vadd.f32 %v183_v52, %v182_v51 }
  0x9a   :  { %180 = vadd.xlane.f32.xlu0 %v179_v50 }
  0x9c   :  { %185 = vadd.xlane.f32.xlu1 %v184_v53 }
  0x9e   :  { %v164_v54 = vpop.f32.mrf.mxu2  ;;  %v177_v55 = vpop.f32.mrf.mxu3 }
 0x105   :  { %v83_v56 = vpop.xlane.xlu0 %82 }
 0x106   :  { %v89_v57 = vmul.f32 0.00390625, %v83_v56 }
 0x107   :  { %v88_v58 = vpop.xlane.xlu1 %87 }
 0x108   :  { %v90_v59 = vmul.f32 0.00390625, %v88_v58  ;;  %v91_v60 = vmul.f32 %v89_v57, %v89_v57  ;;  %v93_v14 = vsub.f32 %v64_v40, %v89_v57  ;;  %v94_v15 = vsub.f32 %v77_v41, %v89_v57 }
 0x10a   :  { %v92_v61 = vsub.f32 %v90_v59, %v91_v60 }
 0x10c   :  { %v95_v62 = vadd.f32 1e-05, %v92_v61 }
 0x10d   :  { %v181_v63 = vpop.xlane.xlu0 %180 }
 0x10e   :  { %281 = vrsqrt.f32 %v95_v62  ;;  %v187_v0 = vmul.f32 0.00390625, %v181_v63  ;;  %vm102_vm3 = vweird.f32 %v95_v62 }
 0x10f   :  { %v186_v1 = vpop.xlane.xlu1 %185 }
 0x110   :  { %v188_v2 = vmul.f32 0.00390625, %v186_v1  ;;  %v189_v3 = vmul.f32 %v187_v0, %v187_v0  ;;  %v191_v25 = vsub.f32 %v162_v46, %v187_v0  ;;  %v192_v26 = vsub.f32 %v175_v47, %v187_v0 }
 0x112   :  { %v190_v4 = vsub.f32 %v188_v2, %v189_v3 }
 0x114   :  { %v282_v5 = vpop.eup %281  ;;  %v193_v6 = vadd.f32 1e-05, %v190_v4 }
 0x115   :  { %v97_v7 = vmul.f32 %v282_v5, %v95_v62  ;;  %vm103_vm2 = vweird.f32 %v282_v5 }
 0x116   :  { %283 = vrsqrt.f32 %v193_v6  ;;  %vm104_vm4 = vmor %vm102_vm3, %vm103_vm2  ;;  %vm200_vm6 = vweird.f32 %v193_v6 }
 0x117   :  { %v98_v8 = vmul.f32 %v282_v5, %v97_v7 }
 0x119   :  { %v99_v9 = vmul.f32 0.5, %v98_v8 }
 0x11b   :  { %v100_v10 = vsub.f32 1.5, %v99_v9 }
 0x11c   :  { %v284_v11 = vpop.eup %283 }
 0x11d   :  { %v101_v12 = vmul.f32 %v282_v5, %v100_v10  ;;  %v195_v13 = vmul.f32 %v284_v11, %v193_v6  ;;  %vm201_vm5 = vweird.f32 %v284_v11 }
 0x11e   :  { %vm202_vm7 = vmor %vm200_vm6, %vm201_vm5 }
 0x11f   :  { %v105_v16 = vsel %vm104_vm4, %v282_v5, %v101_v12  ;;  %v196_v17 = vmul.f32 %v284_v11, %v195_v13 }
 0x120   :  { %v106_v18 = vmul.f32 %v105_v16, %v93_v14  ;;  %v107_v19 = vmul.f32 %v105_v16, %v94_v15 }
 0x121   :  { %v197_v20 = vmul.f32 0.5, %v196_v17 }
 0x122   :  { %v108_v21 = vmax.f32 %v106_v18, 0.0  ;;  %v109_v22 = vmax.f32 %v107_v19, 0.0 }
 0x123   :  { %v198_v23 = vsub.f32 1.5, %v197_v20 }
 0x124   :  { %110 = vst [vmem:[#allocation2] sm:$0xff] %v108_v21 }
 0x125   :  { %111 = vst [vmem:[#allocation2 + $0x8] sm:$0xff] %v109_v22  ;;  %v199_v24 = vmul.f32 %v284_v11, %v198_v23 }
 0x127   :  { %v203_v27 = vsel %vm202_vm7, %v284_v11, %v199_v24 }
 0x128   :  { %v204_v28 = vmul.f32 %v203_v27, %v191_v25  ;;  %v205_v29 = vmul.f32 %v203_v27, %v192_v26 }
 0x12a   :  { %v206_v30 = vmax.f32 %v204_v28, 0.0  ;;  %v207_v31 = vmax.f32 %v205_v29, 0.0 }
 0x12c   :  { %209 = vst [vmem:[#allocation2 + $0x10] sm:$0xff] %v206_v30 }
 0x12d   :  { %210 = vst [vmem:[#allocation2 + $0x18] sm:$0xff] %v207_v31 }
 0x12e   :  { %223 = dma.vmem_to_hbm [thread:$0]  %s216_s1, 512, %s218_s23, [#allocation3], %s312_s24, %s312_s24, %s313_s25  }
 0x12f   :  { %309 = dma.done.wait [#allocation3], 512  }
 0x130   :  { %310 = vsyncadd [#allocation3], 4294966784 }
 0x131   :  { %228 = vsyncpa [#allocation3], 1 }

</bundles_post_ra>
